<compile_context>
chip_gen: v5e
topology: v5e:2x2
jax: 0.10.0
libtpu: 0.0.40
codegen_flags: <defaults>
</compile_context>

<pallas_src>
import jax
import jax.numpy as jnp
from jax.experimental import pallas as pl
from jax.experimental.pallas import tpu as pltpu

LANES = 128


def _scale_shift_kernel(w_ref, b_ref, x_ref, o_ref):
    # w_ref, b_ref: SMEM f32 scalars (shape (1,)); x_ref / o_ref: VMEM tiles.
    w = w_ref[0]
    b = b_ref[0]
    o_ref[...] = (x_ref[...].astype(jnp.float32) * w + b).astype(o_ref.dtype)


def linear_scalar(x, weight, bias, *, tile_rows=2048):
    """y = x * weight + bias, with weight/bias shape-(1,) parameters."""
    orig_shape = x.shape
    orig_dtype = x.dtype

    n = x.size
    flat = x.reshape(-1)

    # Pad only a partial final row (skipped entirely when n % 128 == 0).
    rem = n % LANES
    if rem:
        flat = jnp.pad(flat, (0, LANES - rem))
    rows = flat.shape[0] // LANES

    if rows <= tile_rows:
        # Single full-array block: no grid-step overhead for small inputs.
        block_rows = rows
        padded_rows = rows
    else:
        # Large inputs: big tiles amortize the ~600-cycle per-step cost; pad
        # the row count up to a whole number of tiles (rare path).
        block_rows = tile_rows
        padded_rows = pl.cdiv(rows, tile_rows) * tile_rows
        if padded_rows != rows:
            flat = jnp.pad(flat, (0, (padded_rows - rows) * LANES))

    x2d = flat.reshape(padded_rows, LANES)
    grid = (padded_rows // block_rows,)

    out2d = pl.pallas_call(
        _scale_shift_kernel,
        out_shape=jax.ShapeDtypeStruct((padded_rows, LANES), orig_dtype),
        grid=grid,
        in_specs=[
            pl.BlockSpec(memory_space=pltpu.SMEM),  # weight (1,) f32
            pl.BlockSpec(memory_space=pltpu.SMEM),  # bias   (1,) f32
            pl.BlockSpec((block_rows, LANES), lambda i: (i, 0)),
        ],
        out_specs=pl.BlockSpec((block_rows, LANES), lambda i: (i, 0)),
        input_output_aliases={2: 0},  # reuse x's HBM buffer for the output
        compiler_params=pltpu.CompilerParams(
            dimension_semantics=("parallel",),
        ),
    )(weight.astype(jnp.float32), bias.astype(jnp.float32), x2d)

    if padded_rows * LANES != n:
        return out2d.reshape(-1)[:n].reshape(orig_shape)
    return out2d.reshape(orig_shape)


if __name__ == "__main__":
    key = jax.random.PRNGKey(0)
    kx, kw, kb = jax.random.split(key, 3)

    # Deterministic "parameters" (torch.randn(1) equivalents, synthetic).
    weight = jax.random.normal(kw, (1,), dtype=jnp.float32)
    bias = jax.random.normal(kb, (1,), dtype=jnp.float32)

    # Small NCHW input consistent with the elementwise forward.
    x = jax.random.normal(kx, (2, 4, 16, 16), dtype=jnp.float32)

    y = jax.jit(linear_scalar)(x, weight, bias)
    jax.block_until_ready(y)

    # Correctness check vs plain JAX reference.
    y_ref = x * weight[0] + bias[0]
    assert y.shape == x.shape and y.dtype == x.dtype
    assert jnp.allclose(y, y_ref, atol=1e-6, rtol=1e-6)

    print("KERNEL_OK")
</pallas_src>

<mosaic_0001>
module attributes {stable_mosaic.version = 11 : i64} {
  func.func @_scale_shift_kernel(%arg0: i32, %arg1: memref<1xf32, #tpu.memory_space<smem>>, %arg2: memref<1xf32, #tpu.memory_space<smem>>, %arg3: memref<16x128xf32, #tpu.memory_space<vmem>>, %arg4: memref<16x128xf32, #tpu.memory_space<vmem>>) attributes {dimension_semantics = [#tpu.dimension_semantics<parallel>], iteration_bounds = array<i64: 1>, scalar_prefetch = 0 : i64, scratch_operands = 0 : i64, tpu.core_type = #tpu.core_type<tc>, window_params = [{transform_indices = @transform_0, window_bounds = array<i64: 1>}, {transform_indices = @transform_1, window_bounds = array<i64: 1>}, {transform_indices = @transform_2, window_bounds = array<i64: 16, 128>}, {transform_indices = @transform_3, window_bounds = array<i64: 16, 128>}]} {
    %c0 = arith.constant 0 : index
    %0 = memref.load %arg1[%c0] : memref<1xf32, #tpu.memory_space<smem>>
    %c0_0 = arith.constant 0 : index
    %1 = memref.load %arg2[%c0_0] : memref<1xf32, #tpu.memory_space<smem>>
    %c0_1 = arith.constant 0 : index
    %c0_2 = arith.constant 0 : index
    %2 = vector.load %arg3[%c0_1, %c0_2] : memref<16x128xf32, #tpu.memory_space<vmem>>, vector<16x128xf32>
    %3 = vector.broadcast %0 : f32 to vector<16x128xf32>
    %4 = arith.mulf %2, %3 : vector<16x128xf32>
    %5 = vector.broadcast %1 : f32 to vector<16x128xf32>
    %6 = arith.addf %4, %5 : vector<16x128xf32>
    %c0_3 = arith.constant 0 : index
    %c0_4 = arith.constant 0 : index
    %7 = vector.load %arg4[%c0_3, %c0_4] : memref<16x128xf32, #tpu.memory_space<vmem>>, vector<16x128xf32>
    tpu.vector_store %arg4[%c0_3, %c0_4], %6 {strides = array<i32>} : memref<16x128xf32, #tpu.memory_space<vmem>>, vector<16x128xf32>,
    return
  }
  func.func @transform_0(%arg0: i32) -> i32 {
    %c0_i32 = arith.constant 0 : i32
    %c0_i32_0 = arith.constant 0 : i32
    return %c0_i32 : i32
  }
  func.func @transform_1(%arg0: i32) -> i32 {
    %c0_i32 = arith.constant 0 : i32
    %c0_i32_0 = arith.constant 0 : i32
    return %c0_i32 : i32
  }
  func.func @transform_2(%arg0: i32) -> (i32, i32) {
    %c0_i32 = arith.constant 0 : i32
    %c0_i32_0 = arith.constant 0 : i32
    return %arg0, %c0_i32 : i32, i32
  }
  func.func @transform_3(%arg0: i32) -> (i32, i32) {
    %c0_i32 = arith.constant 0 : i32
    %c0_i32_0 = arith.constant 0 : i32
    return %arg0, %c0_i32 : i32, i32
  }
}

</mosaic_0001>

<bundles_post_ra>
// kernel: linear_scalar.1
= control target key start
LH: loop header
LB: loop body
LE: loop exit
PB: predicated region body
PF: predicated region fallthrough
CT: control target
= control target key end

     0   :  { %s70_s0 = inlined_call_operand.<no memory space> [shape: f32[1], index: 0, kind: input, shape index: {}]   ;;  %s71_s1 = inlined_call_operand.<no memory space> [shape: f32[1], index: 1, kind: input, shape index: {}]   ;;  %s72_s2 = inlined_call_operand.vmem [shape: f32[16,128], index: 2, kind: input, shape index: {}, may-alias: {2,3}]   ;;  %s73_s3 = inlined_call_operand.vmem [shape: f32[16,128], index: 3, kind: output, shape index: {}, may-alias: {2,3}]  }
   0x1   :  { %v18_v0 = vld [vmem:[%s72_s2] sm:$0xff]  ;;  %v20_v1 = vstv %s70_s0  ;;  %v23_v2 = vstv %s71_s1  ;;  %v19_v3 = vld [vmem:[%s72_s2 + $0x8] sm:$0xff] }
   0x2   :  { %v21_v4 = vmul.f32 %v20_v1, %v18_v0  ;;  %v22_v5 = vmul.f32 %v20_v1, %v19_v3 }
   0x4   :  { %v24_v6 = vadd.f32 %v23_v2, %v21_v4  ;;  %v25_v7 = vadd.f32 %v23_v2, %v22_v5 }
   0x6   :  { %26 = vst [vmem:[%s73_s3] sm:$0xff] %v24_v6 }
   0x7   :  { %27 = vst [vmem:[%s73_s3 + $0x8] sm:$0xff] %v25_v7 }

</bundles_post_ra>
